<compile_context>
chip_gen: v5e
topology: v5e:2x2
jax: 0.10.0
libtpu: 0.0.40
codegen_flags: <defaults>
</compile_context>

<pallas_src>
import jax
import jax.numpy as jnp
from jax.experimental import pallas as pl
from jax.experimental.pallas import tpu as pltpu

# ----------------------- model hyper-parameters (small) -----------------------
VOCAB_SIZE = 128
HIDDEN_DIM = 32          # embedding dim / conv in_channels
NUM_CHANNELS = 16        # conv out_channels
KERNEL_SIZES = (3, 4, 5)
MAX_LEN = 16             # sequence length (== max_len so MaxPool covers all)
NUM_CLASSES = 10
BATCH = 2
PADDING_IDX = 0
LANE = 128               # lane-dense padded width (conv features & logits)
MAX_K = max(KERNEL_SIZES)
WIDTH = len(KERNEL_SIZES) * NUM_CHANNELS   # 48 real conv-feature columns


def textcnn_kernel(gids_ref, wpack_ref, ball_ref, mask_ref, wfc_ref, bfc_ref,
                   out_ref):
    """im2col one-hot -> fused (embed+conv) matmul -> ReLU/mask/maxpool -> FC -> log_softmax."""
    max_k, M, _ = gids_ref.shape          # M = B * L
    KV = wpack_ref.shape[0]               # max_k * VOCAB_SIZE
    Wp = wpack_ref.shape[1]               # 128 (padded conv-feature width)
    B = out_ref.shape[0]
    L = M // B

    # ---- im2col one-hot over all taps: hit[m, dk*V+v] = (token(m, tap dk)==v) ----
    col = jax.lax.broadcasted_iota(jnp.int32, (M, KV), 1)
    hit = col == gids_ref[0]                                   # (M, KV) bool
    for dk in range(1, max_k):
        hit = jnp.logical_or(hit, col == gids_ref[dk])
    onehot = hit.astype(jnp.float32).astype(jnp.bfloat16)      # exact 0/1 bf16

    # ---- embedding lookup + every conv tap of every branch: ONE MXU matmul ----
    conv = jnp.dot(onehot, wpack_ref[...],
                   preferred_element_type=jnp.float32)          # (M, Wp) f32
    conv = conv.reshape(B, L, Wp)

    # ---- bias + ReLU, zero invalid pool positions (max-safe: ReLU >= 0) ----
    conv = jnp.maximum(conv + ball_ref[...], 0.0) * mask_ref[...]
    pooled = jnp.max(conv, axis=1)                              # (B, Wp)

    # ---- dropout(eval)==identity; single lane-dense FC + log_softmax ----
    logits = jnp.dot(pooled, wfc_ref[...],
                     preferred_element_type=jnp.float32) + bfc_ref[...]  # (B, LANE)
    m = jnp.max(logits, axis=1, keepdims=True)
    sh = logits - m
    out_ref[...] = sh - jnp.log(jnp.sum(jnp.exp(sh), axis=1, keepdims=True))


def pack_params(params):
    """Fold embedding + 3 conv branches + FC into kernel-friendly packed weights."""
    H, C = HIDDEN_DIM, NUM_CHANNELS
    emb = params['embedding']                              # (V, H) f32, row 0 == 0
    ws = (params['w1'], params['w2'], params['w3'])        # each (k, H, C)

    # One (V, 128) slab per tap dk: cols [j*C,(j+1)*C) hold branch j's tap dk
    # (zero when dk >= k_j), cols [3C,128) are zero lane padding.  The embedding
    # table is folded in (emb @ W_dk), so the kernel's one-hot matmul performs
    # lookup + conv in one MXU pass with K = max_k*128.
    blocks = []
    for dk in range(MAX_K):
        wdk = jnp.zeros((H, LANE), jnp.float32)
        for j, k in enumerate(KERNEL_SIZES):
            if dk < k:
                wdk = wdk.at[:, j * C:(j + 1) * C].set(ws[j][dk])
        blocks.append(emb @ wdk)                           # (V, 128)
    w_pack = jnp.concatenate(blocks, axis=0).astype(jnp.bfloat16)  # (max_k*V, 128)

    ball = jnp.pad(jnp.concatenate([params['b1'], params['b2'], params['b3']],
                                   axis=1),
                   ((0, 0), (0, LANE - WIDTH)))            # (1, 128) f32

    # Host-precomputed max-pool validity mask: position l valid for branch j iff
    # l < MAX_LEN - k_j + 1; padded lanes masked off too.
    thr = []
    for k in KERNEL_SIZES:
        thr += [MAX_LEN - k + 1] * C
    thr += [0] * (LANE - WIDTH)
    thr = jnp.asarray(thr, dtype=jnp.int32)                                # (128,)
    pos = jnp.arange(MAX_LEN, dtype=jnp.int32)[:, None]
    mask = (pos < thr[None, :]).astype(jnp.float32)                        # (L, 128)

    # FC padded to 128x128; padded classes get bias -1e30 (kept in f32) so they
    # vanish from the softmax normalizer.
    wfc = jnp.pad(params['wfc'], ((0, LANE - WIDTH), (0, LANE - NUM_CLASSES)))
    bfc = jnp.pad(params['bfc'], ((0, 0), (0, LANE - NUM_CLASSES)),
                  constant_values=-1e30)
    return {'w_pack': w_pack, 'ball': ball, 'mask': mask, 'wfc': wfc, 'bfc': bfc}


@jax.jit
def textcnn_forward(text, text_lengths, packed):
    """text: (B, L) int32 token ids; text_lengths unused (matches reference)."""
    del text_lengths
    B, L = text.shape
    # Pad ids with padding_idx so every shifted tap window is in-range; the
    # padding row of the (folded) embedding is zero and invalid pool positions
    # are masked in-kernel.
    text_pad = jnp.pad(text, ((0, 0), (0, MAX_K - 1)),
                       constant_values=PADDING_IDX).astype(jnp.int32)
    # Per-tap shifted token ids with block-global offsets (dk*V + id), laid out
    # as columns (max_k, B*L, 1) so no in-kernel lane->sublane transpose.
    shifts = jnp.stack([text_pad[:, dk:dk + L] for dk in range(MAX_K)], axis=0)
    offs = (jnp.arange(MAX_K, dtype=jnp.int32) * VOCAB_SIZE)[:, None, None]
    gids = (shifts + offs).reshape(MAX_K, B * L, 1)

    vmem = pl.BlockSpec(memory_space=pltpu.MemorySpace.VMEM)
    out_pad = pl.pallas_call(
        textcnn_kernel,
        out_shape=jax.ShapeDtypeStruct((B, LANE), jnp.float32),
        in_specs=[vmem] * 6,
        out_specs=vmem,
    )(gids, packed['w_pack'], packed['ball'], packed['mask'],
      packed['wfc'], packed['bfc'])
    return out_pad[:, :NUM_CLASSES]


def init_params(key):
    keys = jax.random.split(key, 10)
    scale = 0.1

    emb = scale * jax.random.normal(keys[0], (VOCAB_SIZE, HIDDEN_DIM), jnp.float32)
    emb = emb.at[PADDING_IDX].set(0.0)                        # padding_idx row = 0

    def conv_params(kw, kb, k):
        # PyTorch Conv1d weight is (C_out, C_in, k); store as (k, C_in, C_out)
        w = scale * jax.random.normal(kw, (k, HIDDEN_DIM, NUM_CHANNELS), jnp.float32)
        b = scale * jax.random.normal(kb, (1, NUM_CHANNELS), jnp.float32)
        return w, b

    w1, b1 = conv_params(keys[1], keys[2], KERNEL_SIZES[0])
    w2, b2 = conv_params(keys[3], keys[4], KERNEL_SIZES[1])
    w3, b3 = conv_params(keys[5], keys[6], KERNEL_SIZES[2])

    # PyTorch Linear weight is (num_classes, 3C); store transposed (3C, num_classes)
    wfc = scale * jax.random.normal(
        keys[7], (NUM_CHANNELS * len(KERNEL_SIZES), NUM_CLASSES), jnp.float32)
    bfc = scale * jax.random.normal(keys[8], (1, NUM_CLASSES), jnp.float32)

    return {'embedding': emb, 'w1': w1, 'b1': b1, 'w2': w2, 'b2': b2,
            'w3': w3, 'b3': b3, 'wfc': wfc, 'bfc': bfc}


def reference_forward(text, params):
    """Pure-JAX reference matching the PyTorch forward (eval mode)."""
    emb = jnp.take(params['embedding'], text, axis=0)         # (B, L, H)
    feats = []
    for w, b in ((params['w1'], params['b1']),
                 (params['w2'], params['b2']),
                 (params['w3'], params['b3'])):
        k = w.shape[0]
        lout = MAX_LEN - k + 1
        conv = sum(jnp.einsum('blh,hc->blc', emb[:, dk:dk + lout, :], w[dk])
                   for dk in range(k)) + b[None]              # (B, lout, C)
        feats.append(jnp.max(jnp.maximum(conv, 0.0), axis=1))  # (B, C)
    feat = jnp.concatenate(feats, axis=1)                      # (B, 3C)
    logits = feat @ params['wfc'] + params['bfc']
    return jax.nn.log_softmax(logits, axis=1)


if __name__ == "__main__":
    key = jax.random.PRNGKey(0)
    pkey, tkey = jax.random.split(key)
    params = init_params(pkey)
    packed = pack_params(params)

    # x = (text, text_lengths), text: (B, max_len) token ids
    text = jax.random.randint(tkey, (BATCH, MAX_LEN), 0, VOCAB_SIZE, dtype=jnp.int32)
    text_lengths = jnp.full((BATCH,), MAX_LEN, dtype=jnp.int32)

    out = textcnn_forward(text, text_lengths, packed)
    out = jax.block_until_ready(out)

    assert out.shape == (BATCH, NUM_CLASSES)
    # log_softmax rows must sum to ~1 after exp
    assert jnp.allclose(jnp.sum(jnp.exp(out), axis=1), 1.0, atol=1e-4)
    # compare against unfused pure-JAX f32 reference (tolerance covers bf16
    # packed conv weights + MXU accumulation-order differences)
    ref = reference_forward(text, params)
    assert jnp.allclose(out, ref, atol=2e-2, rtol=2e-2), float(jnp.max(jnp.abs(out - ref)))
    print("KERNEL_OK")
</pallas_src>

<mosaic_0001>
module attributes {stable_mosaic.version = 11 : i64} {
  func.func @textcnn_kernel(%arg0: memref<5x32x1xi32, #tpu.memory_space<vmem>>, %arg1: memref<640x128xbf16, #tpu.memory_space<vmem>>, %arg2: memref<1x128xf32, #tpu.memory_space<vmem>>, %arg3: memref<16x128xf32, #tpu.memory_space<vmem>>, %arg4: memref<128x128xf32, #tpu.memory_space<vmem>>, %arg5: memref<1x128xf32, #tpu.memory_space<vmem>>, %arg6: memref<2x128xf32, #tpu.memory_space<vmem>>) attributes {dimension_semantics = [], scalar_prefetch = 0 : i64, scratch_operands = 0 : i64, tpu.core_type = #tpu.core_type<tc>} {
    %0 = tpu.iota {dimensions = array<i32: 1>} : vector<32x640xi32>
    %c0 = arith.constant 0 : index
    %c0_0 = arith.constant 0 : index
    %c0_1 = arith.constant 0 : index
    %1 = vector.load %arg0[%c0, %c0_0, %c0_1] : memref<5x32x1xi32, #tpu.memory_space<vmem>>, vector<1x32x1xi32>
    %2 = vector.shape_cast %1 : vector<1x32x1xi32> to vector<32x1xi32>
    %3 = vector.broadcast %2 : vector<32x1xi32> to vector<32x640xi32>
    %4 = arith.cmpi eq, %0, %3 : vector<32x640xi32>
    %c1 = arith.constant 1 : index
    %c0_2 = arith.constant 0 : index
    %c0_3 = arith.constant 0 : index
    %5 = vector.load %arg0[%c1, %c0_2, %c0_3] : memref<5x32x1xi32, #tpu.memory_space<vmem>>, vector<1x32x1xi32>
    %6 = vector.shape_cast %5 : vector<1x32x1xi32> to vector<32x1xi32>
    %7 = vector.broadcast %6 : vector<32x1xi32> to vector<32x640xi32>
    %8 = arith.cmpi eq, %0, %7 : vector<32x640xi32>
    %9 = arith.ori %4, %8 : vector<32x640xi1>
    %c2 = arith.constant 2 : index
    %c0_4 = arith.constant 0 : index
    %c0_5 = arith.constant 0 : index
    %10 = vector.load %arg0[%c2, %c0_4, %c0_5] : memref<5x32x1xi32, #tpu.memory_space<vmem>>, vector<1x32x1xi32>
    %11 = vector.shape_cast %10 : vector<1x32x1xi32> to vector<32x1xi32>
    %12 = vector.broadcast %11 : vector<32x1xi32> to vector<32x640xi32>
    %13 = arith.cmpi eq, %0, %12 : vector<32x640xi32>
    %14 = arith.ori %9, %13 : vector<32x640xi1>
    %c3 = arith.constant 3 : index
    %c0_6 = arith.constant 0 : index
    %c0_7 = arith.constant 0 : index
    %15 = vector.load %arg0[%c3, %c0_6, %c0_7] : memref<5x32x1xi32, #tpu.memory_space<vmem>>, vector<1x32x1xi32>
    %16 = vector.shape_cast %15 : vector<1x32x1xi32> to vector<32x1xi32>
    %17 = vector.broadcast %16 : vector<32x1xi32> to vector<32x640xi32>
    %18 = arith.cmpi eq, %0, %17 : vector<32x640xi32>
    %19 = arith.ori %14, %18 : vector<32x640xi1>
    %c4 = arith.constant 4 : index
    %c0_8 = arith.constant 0 : index
    %c0_9 = arith.constant 0 : index
    %20 = vector.load %arg0[%c4, %c0_8, %c0_9] : memref<5x32x1xi32, #tpu.memory_space<vmem>>, vector<1x32x1xi32>
    %21 = vector.shape_cast %20 : vector<1x32x1xi32> to vector<32x1xi32>
    %22 = vector.broadcast %21 : vector<32x1xi32> to vector<32x640xi32>
    %23 = arith.cmpi eq, %0, %22 : vector<32x640xi32>
    %24 = arith.ori %19, %23 : vector<32x640xi1>
    %25 = arith.extui %24 : vector<32x640xi1> to vector<32x640xi32>
    %26 = arith.sitofp %25 : vector<32x640xi32> to vector<32x640xf32>
    %27 = arith.truncf %26 : vector<32x640xf32> to vector<32x640xbf16>
    %c0_10 = arith.constant 0 : index
    %c0_11 = arith.constant 0 : index
    %28 = vector.load %arg1[%c0_10, %c0_11] : memref<640x128xbf16, #tpu.memory_space<vmem>>, vector<640x128xbf16>
    %cst = arith.constant dense<0.000000e+00> : vector<32x128xf32>
    %29 = tpu.matmul %27, %28, %cst {dimension_numbers = #tpu.dot_dimension_numbers<[1], [0], [0], [1], [0, 0, 1, 1], [], []>} : vector<32x640xbf16>, vector<640x128xbf16>, vector<32x128xf32> -> vector<32x128xf32>
    %30 = vector.shape_cast %29 : vector<32x128xf32> to vector<2x16x128xf32>
    %c0_12 = arith.constant 0 : index
    %c0_13 = arith.constant 0 : index
    %31 = vector.load %arg2[%c0_12, %c0_13] : memref<1x128xf32, #tpu.memory_space<vmem>>, vector<1x128xf32>
    %32 = vector.shape_cast %31 : vector<1x128xf32> to vector<1x1x128xf32>
    %33 = vector.broadcast %32 : vector<1x1x128xf32> to vector<2x16x128xf32>
    %34 = arith.addf %30, %33 : vector<2x16x128xf32>
    %cst_14 = arith.constant 0.000000e+00 : f32
    %35 = vector.broadcast %cst_14 : f32 to vector<2x16x128xf32>
    %36 = arith.maximumf %34, %35 : vector<2x16x128xf32>
    %c0_15 = arith.constant 0 : index
    %c0_16 = arith.constant 0 : index
    %37 = vector.load %arg3[%c0_15, %c0_16] : memref<16x128xf32, #tpu.memory_space<vmem>>, vector<16x128xf32>
    %38 = vector.shape_cast %37 : vector<16x128xf32> to vector<1x16x128xf32>
    %39 = vector.broadcast %38 : vector<1x16x128xf32> to vector<2x16x128xf32>
    %40 = arith.mulf %36, %39 : vector<2x16x128xf32>
    %cst_17 = arith.constant dense<0xFF800000> : vector<2x128xf32>
    %41 = vector.multi_reduction <maximumf>, %40, %cst_17 [1] : vector<2x16x128xf32> to vector<2x128xf32>
    %c0_18 = arith.constant 0 : index
    %c0_19 = arith.constant 0 : index
    %42 = vector.load %arg4[%c0_18, %c0_19] : memref<128x128xf32, #tpu.memory_space<vmem>>, vector<128x128xf32>
    %cst_20 = arith.constant dense<0.000000e+00> : vector<2x128xf32>
    %43 = tpu.matmul %41, %42, %cst_20 {dimension_numbers = #tpu.dot_dimension_numbers<[1], [0], [0], [1], [0, 0, 1, 1], [], []>} : vector<2x128xf32>, vector<128x128xf32>, vector<2x128xf32> -> vector<2x128xf32>
    %c0_21 = arith.constant 0 : index
    %c0_22 = arith.constant 0 : index
    %44 = vector.load %arg5[%c0_21, %c0_22] : memref<1x128xf32, #tpu.memory_space<vmem>>, vector<1x128xf32>
    %45 = vector.broadcast %44 : vector<1x128xf32> to vector<2x128xf32>
    %46 = arith.addf %43, %45 : vector<2x128xf32>
    %cst_23 = arith.constant dense<0xFF800000> : vector<2xf32>
    %47 = vector.multi_reduction <maximumf>, %46, %cst_23 [1] : vector<2x128xf32> to vector<2xf32>
    %48 = vector.shape_cast %47 : vector<2xf32> to vector<2x1xf32>
    %49 = vector.broadcast %48 : vector<2x1xf32> to vector<2x128xf32>
    %50 = arith.subf %46, %49 : vector<2x128xf32>
    %51 = math.exp %50 : vector<2x128xf32>
    %cst_24 = arith.constant dense<0.000000e+00> : vector<2xf32>
    %52 = vector.multi_reduction <add>, %51, %cst_24 [1] : vector<2x128xf32> to vector<2xf32>
    %53 = vector.shape_cast %52 : vector<2xf32> to vector<2x1xf32>
    %54 = math.log %53 : vector<2x1xf32>
    %55 = vector.broadcast %54 : vector<2x1xf32> to vector<2x128xf32>
    %56 = arith.subf %50, %55 : vector<2x128xf32>
    %c0_25 = arith.constant 0 : index
    %c0_26 = arith.constant 0 : index
    %57 = vector.load %arg6[%c0_25, %c0_26] : memref<2x128xf32, #tpu.memory_space<vmem>>, vector<2x128xf32>
    tpu.vector_store %arg6[%c0_25, %c0_26], %56 {strides = array<i32>} : memref<2x128xf32, #tpu.memory_space<vmem>>, vector<2x128xf32>,
    return
  }
}

</mosaic_0001>

<bundles_post_ra>
// kernel: textcnn_forward.1
= control target key start
LH: loop header
LB: loop body
LE: loop exit
PB: predicated region body
PF: predicated region fallthrough
CT: control target
= control target key end

     0   :  { %v1148_v3 = vmov 0   ;;  %s1861_s0 = inlined_call_operand.vmem [shape: s32[5,32,1], index: 0, kind: input, shape index: {}]   ;;  %s1862_s1 = inlined_call_operand.vmem [shape: bf16[640,128], index: 1, kind: input, shape index: {}]   ;;  %s1863_s2 = inlined_call_operand.vmem [shape: f32[1,128], index: 2, kind: input, shape index: {}]   ;;  %s1864_s3 = inlined_call_operand.vmem [shape: f32[16,128], index: 3, kind: input, shape index: {}]   ;;  %s1865_s4 = inlined_call_operand.vmem [shape: f32[128,128], index: 4, kind: input, shape index: {}]   ;;  %s1866_s5 = inlined_call_operand.vmem [shape: f32[1,128], index: 5, kind: input, shape index: {}]   ;;  %s1867_s6 = inlined_call_operand.hbm [shape: f32[2,128], index: 6, kind: output, shape index: {}]  }
   0x1   :  { %v870_v0 = vld [vmem:[%s1861_s0 + $0x40] sm:$0xff]  ;;  %1115 = vset.pattern.permute.xlu2 %v1148_v3  ;;  %1114 = vset.pattern.permute.xlu1 %v1148_v3 }
   0x2   :  { %v866_v1 = vld [vmem:[%s1861_s0 + $0x20] sm:$0xff]  ;;  %1113 = vset.pattern.permute.xlu0 %v1148_v3  ;;  %129 = vperm.xlu2 %1115, %v870_v0  }
   0x3   :  { %v30_v2 = vld [vmem:[%s1861_s0] sm:$0xff]  ;;  %72 = vperm.xlu1 %1114, %v866_v1  }
   0x4   :  { %35 = vperm.xlu0 %1113, %v30_v2  }
   0x5   :  { %11 = vsyncpa [#allocation3], 0  ;;  %v871_v4 = vld [vmem:[%s1861_s0 + $0x48] sm:$0xff]  ;;  %v878_v7 = vld [vmem:[%s1861_s0 + $0x80] sm:$0xff]  ;;  %v24_v50 = vlaneseq  ;;  %s1150_s27 = smov [#allocation2]  }
   0x6   :  { %v867_v5 = vld [vmem:[%s1861_s0 + $0x28] sm:$0xff]  ;;  %v874_v9 = vld [vmem:[%s1861_s0 + $0x60] sm:$0xff]  ;;  %v33_v10 = vld [vmem:[%s1861_s0 + $0x18] sm:$0xff]  ;;  %s855_s28 = sshll.u32 %s1150_s27, 4  ;;  %s856_s28 = int_to_ptr.vmem [resolvable:$true] %s855_s28 }
   0x7   :  { %v31_v6 = vld [vmem:[%s1861_s0 + $0x8] sm:$0xff]  ;;  %v32_v11 = vld [vmem:[%s1861_s0 + $0x10] sm:$0xff]  ;;  %v869_v14 = vld [vmem:[%s1861_s0 + $0x38] sm:$0xff]  ;;  %v1344_v55 = vand.u32 127, %v24_v50 }
   0x8   :  { %v875_v8 = vld [vmem:[%s1861_s0 + $0x68] sm:$0xff]  ;;  %v872_v13 = vld [vmem:[%s1861_s0 + $0x50] sm:$0xff]  ;;  %v877_v16 = vld [vmem:[%s1861_s0 + $0x78] sm:$0xff] }
   0x9   :  { %v879_v12 = vld [vmem:[%s1861_s0 + $0x88] sm:$0xff]  ;;  %v868_v15 = vld [vmem:[%s1861_s0 + $0x30] sm:$0xff]  ;;  %v873_v18 = vld [vmem:[%s1861_s0 + $0x58] sm:$0xff]  ;;  %v1353_v59 = vadd.s32 128, %v1344_v55  ;;  %v1356_v60 = vadd.s32 256, %v1344_v55  ;;  %v1363_v61 = vadd.s32 384, %v1344_v55 }
   0xa   :  { %132 = vperm.xlu2 %1115, %v871_v4   ;;  %v876_v17 = vld [vmem:[%s1861_s0 + $0x70] sm:$0xff]  ;;  %v881_v19 = vld [vmem:[%s1861_s0 + $0x98] sm:$0xff]  ;;  %v1067_v29 = vld [vmem:[%s1862_s1 + $0x28] sm:$0xff] }
   0xb   :  { %75 = vperm.xlu1 %1114, %v867_v5   ;;  %v880_v20 = vld [vmem:[%s1861_s0 + $0x90] sm:$0xff]  ;;  %v1069_v21 = vld [vmem:[%s1862_s1 + $0x38] sm:$0xff]  ;;  %v1075_v30 = vld [vmem:[%s1862_s1 + $0x68] sm:$0xff] }
   0xc   :  { %38 = vperm.xlu0 %1113, %v31_v6   ;;  %v1077_v22 = vld [vmem:[%s1862_s1 + $0x78] sm:$0xff]  ;;  %664 = vmatpush.bf16.msra.mxu0 %v1069_v21  ;;  %v1068_v25 = vld [vmem:[%s1862_s1 + $0x30] sm:$0xff]  ;;  %v1083_v31 = vld [vmem:[%s1862_s1 + $0xa8] sm:$0xff]  ;;  %v1874_v6 = vmov 0  ;;  %v29_v21 = vadd.s32 512, %v1344_v55 }
   0xd   :  { %v1085_v23 = vld [vmem:[%s1862_s1 + $0xb8] sm:$0xff]  ;;  %683 = vmatpush.bf16.msra.mxu1 %v1077_v22  ;;  %v1076_v26 = vld [vmem:[%s1862_s1 + $0x70] sm:$0xff]  ;;  %v1091_v32 = vld [vmem:[%s1862_s1 + $0xe8] sm:$0xff] }
   0xe   :  { %v1093_v24 = vld [vmem:[%s1862_s1 + $0xf8] sm:$0xff]  ;;  %702 = vmatpush.bf16.msra.mxu2 %v1085_v23  ;;  %v1084_v27 = vld [vmem:[%s1862_s1 + $0xb0] sm:$0xff]  ;;  %v1066_v33 = vld [vmem:[%s1862_s1 + $0x20] sm:$0xff] }
   0xf   :  { %721 = vmatpush.bf16.msra.mxu3 %v1093_v24  ;;  %v1092_v28 = vld [vmem:[%s1862_s1 + $0xf0] sm:$0xff]  ;;  %v1074_v34 = vld [vmem:[%s1862_s1 + $0x60] sm:$0xff]  ;;  %v1065_v37 = vld [vmem:[%s1862_s1 + $0x18] sm:$0xff] }
  0x10   :  { %665 = vmatpush.bf16.msra.mxu0 %v1068_v25  ;;  %v1082_v35 = vld [vmem:[%s1862_s1 + $0xa0] sm:$0xff]  ;;  %v1073_v38 = vld [vmem:[%s1862_s1 + $0x58] sm:$0xff]  ;;  %v1064_v41 = vld [vmem:[%s1862_s1 + $0x10] sm:$0xff] }
  0x11   :  { %684 = vmatpush.bf16.msra.mxu1 %v1076_v26  ;;  %v1090_v36 = vld [vmem:[%s1862_s1 + $0xe0] sm:$0xff]  ;;  %v1081_v39 = vld [vmem:[%s1862_s1 + $0x98] sm:$0xff]  ;;  %v1072_v42 = vld [vmem:[%s1862_s1 + $0x50] sm:$0xff] }
  0x12   :  { %243 = vperm.xlu2 %1115, %v878_v7   ;;  %703 = vmatpush.bf16.msra.mxu2 %v1084_v27  ;;  %v1089_v40 = vld [vmem:[%s1862_s1 + $0xd8] sm:$0xff]  ;;  %v1080_v43 = vld [vmem:[%s1862_s1 + $0x90] sm:$0xff]  ;;  %v1063_v45 = vld [vmem:[%s1862_s1 + $0x8] sm:$0xff] }
  0x13   :  { %189 = vperm.xlu1 %1114, %v875_v8   ;;  %722 = vmatpush.bf16.msra.mxu3 %v1092_v28  ;;  %v1088_v44 = vld [vmem:[%s1862_s1 + $0xd0] sm:$0xff]  ;;  %v1071_v46 = vld [vmem:[%s1862_s1 + $0x48] sm:$0xff]  ;;  %v1062_v51 = vld [vmem:[%s1862_s1] sm:$0xff]  ;;  %v1149_v28 = vmov 0.0  }
  0x14   :  { %186 = vperm.xlu0 %1113, %v874_v9   ;;  %666 = vmatpush.bf16.msra.mxu0 %v1067_v29  ;;  %v1079_v47 = vld [vmem:[%s1862_s1 + $0x88] sm:$0xff]  ;;  %v1070_v52 = vld [vmem:[%s1862_s1 + $0x40] sm:$0xff]  ;;  %v1101_v62 = vld [vmem:[%s1862_s1 + $0x138] sm:$0xff] }
  0x15   :  { %685 = vmatpush.bf16.msra.mxu1 %v1075_v30  ;;  %v1087_v48 = vld [vmem:[%s1862_s1 + $0xc8] sm:$0xff]  ;;  %v1078_v53 = vld [vmem:[%s1862_s1 + $0x80] sm:$0xff]  ;;  %v1100_v5 = vld [vmem:[%s1862_s1 + $0x130] sm:$0xff] }
  0x16   :  { %704 = vmatpush.bf16.msra.mxu2 %v1083_v31  ;;  %v1086_v54 = vld [vmem:[%s1862_s1 + $0xc0] sm:$0xff]  ;;  %v1099_v7 = vld [vmem:[%s1862_s1 + $0x128] sm:$0xff]  ;;  %v805_v27 = vld [vmem:[%s1865_s4 + $0x70] sm:$0xff] }
  0x17   :  { %723 = vmatpush.bf16.msra.mxu3 %v1091_v32  ;;  %v1095_v3 = vld [vmem:[%s1862_s1 + $0x108] sm:$0xff]  ;;  %v799_v50 = vld [vmem:[%s1865_s4 + $0x40] sm:$0xff] }
  0x18   :  { %667 = vmatpush.bf16.msra.mxu0 %v1066_v33 }
  0x19   :  { %686 = vmatpush.bf16.msra.mxu1 %v1074_v34 }
  0x1a   :  { %44 = vperm.xlu2 %1115, %v33_v10   ;;  %705 = vmatpush.bf16.msra.mxu2 %v1082_v35  ;;  %v796_v10 = vld [vmem:[%s1865_s4 + $0x28] sm:$0xff] }
  0x1b   :  { %41 = vperm.xlu1 %1114, %v32_v11   ;;  %724 = vmatpush.bf16.msra.mxu3 %v1090_v36  ;;  %v771_v11 = vld [vmem:[%s1864_s3] sm:$0xff] }
  0x1c   :  { %246 = vperm.xlu0 %1113, %v879_v12   ;;  %668 = vmatpush.bf16.msra.mxu0 %v1065_v37 }
  0x1d   :  { %687 = vmatpush.bf16.msra.mxu1 %v1073_v38 }
  0x1e   :  { %706 = vmatpush.bf16.msra.mxu2 %v1081_v39 }
  0x1f   :  { %725 = vmatpush.bf16.msra.mxu3 %v1089_v40 }
  0x20   :  { %669 = vmatpush.bf16.msra.mxu0 %v1064_v41 }
  0x21   :  { %688 = vmatpush.bf16.msra.mxu1 %v1072_v42 }
  0x22   :  { %135 = vperm.xlu2 %1115, %v872_v13   ;;  %707 = vmatpush.bf16.msra.mxu2 %v1080_v43 }
  0x23   :  { %81 = vperm.xlu1 %1114, %v869_v14   ;;  %726 = vmatpush.bf16.msra.mxu3 %v1088_v44 }
  0x24   :  { %78 = vperm.xlu0 %1113, %v868_v15   ;;  %670 = vmatpush.bf16.msra.mxu0 %v1063_v45 }
  0x25   :  { %689 = vmatpush.bf16.msra.mxu1 %v1071_v46  ;;  %v1097_v46 = vld [vmem:[%s1862_s1 + $0x118] sm:$0xff] }
  0x26   :  { %708 = vmatpush.bf16.msra.mxu2 %v1079_v47  ;;  %v800_v47 = vld [vmem:[%s1865_s4 + $0x48] sm:$0xff] }
  0x27   :  { %727 = vmatpush.bf16.msra.mxu3 %v1087_v48 }
  0x28   :  { %671 = vmatpush.bf16.msra.mxu0 %v1062_v51  ;;  %v1096_v51 = vld [vmem:[%s1862_s1 + $0x110] sm:$0xff] }
  0x29   :  { %690 = vmatpush.bf16.msra.mxu1 %v1070_v52 }
  0x2a   :  { %195 = vperm.xlu2 %1115, %v877_v16   ;;  %709 = vmatpush.bf16.msra.mxu2 %v1078_v53  ;;  %v1098_v16 = vld [vmem:[%s1862_s1 + $0x120] sm:$0xff] }
  0x2b   :  { %192 = vperm.xlu1 %1114, %v876_v17   ;;  %728 = vmatpush.bf16.msra.mxu3 %v1086_v54 }
  0x2c   :  { %138 = vperm.xlu0 %1113, %v873_v18   ;;  %740 = vmatpush.bf16.msrb.mxu0 %v1101_v62  ;;  %v1888_v18 = vmov 0 }
  0x2e   :  { %1102 = vmatpush.bf16.msrb.mxu2 %v1101_v62  ;;  %v798_v62 = vld [vmem:[%s1865_s4 + $0x38] sm:$0xff] }
  0x30   :  { %741 = vmatpush.bf16.msrb.mxu0 %v1100_v5 }
  0x32   :  { %1103 = vmatpush.bf16.msrb.mxu2 %v1100_v5  ;;  %v797_v5 = vld [vmem:[%s1865_s4 + $0x30] sm:$0xff] }
  0x33   :  { %252 = vperm.xlu1 %1114, %v881_v19  }
  0x34   :  { %249 = vperm.xlu0 %1113, %v880_v20   ;;  %742 = vmatpush.bf16.msrb.mxu0 %v1099_v7 }
  0x36   :  { %1104 = vmatpush.bf16.msrb.mxu2 %v1099_v7  ;;  %v1094_v7 = vld [vmem:[%s1862_s1 + $0x100] sm:$0xff] }
  0x38   :  { %743 = vmatpush.bf16.msrb.mxu0 %v1098_v16 }
  0x3a   :  { %1105 = vmatpush.bf16.msrb.mxu2 %v1098_v16 }
  0x3c   :  { %744 = vmatpush.bf16.msrb.mxu0 %v1097_v46 }
  0x3e   :  { %1106 = vmatpush.bf16.msrb.mxu2 %v1097_v46  ;;  %v1116_v46 = vld [vmem:[%s1863_s2] ss:$0 sm:$0xff] }
  0x40   :  { %745 = vmatpush.bf16.msrb.mxu0 %v1096_v51 }
  0x42   :  { %1107 = vmatpush.bf16.msrb.mxu2 %v1096_v51 }
  0x44   :  { %746 = vmatpush.bf16.msrb.mxu0 %v1095_v3 }
  0x46   :  { %1108 = vmatpush.bf16.msrb.mxu2 %v1095_v3 }
  0x48   :  { %747 = vmatpush.bf16.msrb.mxu0 %v1094_v7 }
  0x4a   :  { %1109 = vmatpush.bf16.msrb.mxu2 %v1094_v7  ;;  %v772_v7 = vld [vmem:[%s1864_s3 + $0x8] sm:$0xff] }
  0x5c   :  { %v1330_v49 = vpop.permute.xlu2 %129 }
  0x5d   :  { %vm140_vm5 = vcmp.eq.s32.totalorder %v1344_v55, %v1330_v49  ;;  %vm141_vm14 = vcmp.eq.s32.totalorder %v1353_v59, %v1330_v49 }
  0x64   :  { %v1346_v56 = vpop.permute.xlu2 %132 }
  0x6c   :  { %v1390_v2 = vpop.permute.xlu2 %243 }
  0x74   :  { %v1481_v17 = vpop.permute.xlu2 %44 }
  0x75   :  { %v1348_v57 = vpop.permute.xlu1 %72 }
  0x76   :  { %v1350_v58 = vpop.permute.xlu0 %35  ;;  %vm83_vm1 = vcmp.eq.s32.totalorder %v1344_v55, %v1348_v57  ;;  %vm84_vm3 = vcmp.eq.s32.totalorder %v1353_v59, %v1348_v57  ;;  %vm85_vm7 = vcmp.eq.s32.totalorder %v1356_v60, %v1348_v57  ;;  %vm86_vm10 = vcmp.eq.s32.totalorder %v1363_v61, %v1348_v57 }
  0x77   :  { %vm46_vm0 = vcmp.eq.s32.totalorder %v1344_v55, %v1350_v58  ;;  %vm47_vm2 = vcmp.eq.s32.totalorder %v1353_v59, %v1350_v58  ;;  %vm48_vm6 = vcmp.eq.s32.totalorder %v1356_v60, %v1350_v58  ;;  %vm49_vm9 = vcmp.eq.s32.totalorder %v1363_v61, %v1350_v58 }
  0x78   :  { %vm103_vm4 = vmor %vm46_vm0, %vm83_vm1 }
  0x79   :  { %vm1382_vm8 = vmor %vm47_vm2, %vm84_vm3 }
  0x7a   :  { %vm1396_vm13 = vmor %vm103_vm4, %vm140_vm5 }
  0x7b   :  { %vm1402_vm15 = vmor %vm48_vm6, %vm85_vm7  ;;  %vm145_vm6 = vcmp.eq.s32.totalorder %v1344_v55, %v1346_v56 }
  0x7c   :  { %vm1417_vm5 = vmor %vm49_vm9, %vm86_vm10  ;;  %vm142_vm9 = vcmp.eq.s32.totalorder %v1356_v60, %v1330_v49  ;;  %v1571_v34 = vpop.permute.xlu2 %135 }
  0x7d   :  { %v1378_v63 = vpop.permute.xlu1 %75  ;;  %v1875_v6 = vsel %vm1417_vm5, 4294967295, %v1874_v6 }
  0x7e   :  { %v1380_v0 = vpop.permute.xlu0 %38  ;;  %vm88_vm12 = vcmp.eq.s32.totalorder %v1344_v55, %v1378_v63  ;;  %vm89_vm2 = vcmp.eq.s32.totalorder %v1353_v59, %v1378_v63  ;;  %vm90_vm4 = vcmp.eq.s32.totalorder %v1356_v60, %v1378_v63 }
  0x7f   :  { %vm51_vm11 = vcmp.eq.s32.totalorder %v1344_v55, %v1380_v0  ;;  %vm52_vm1 = vcmp.eq.s32.totalorder %v1353_v59, %v1380_v0  ;;  %vm53_vm3 = vcmp.eq.s32.totalorder %v1356_v60, %v1380_v0 }
  0x80   :  { %vm108_vm0 = vmor %vm51_vm11, %vm88_vm12  ;;  %vm146_vm12 = vcmp.eq.s32.totalorder %v1353_v59, %v1346_v56 }
  0x81   :  { %vm109_vm7 = vmor %vm52_vm1, %vm89_vm2  ;;  %vm54_vm1 = vcmp.eq.s32.totalorder %v1363_v61, %v1380_v0 }
  0x82   :  { %vm1428_vm11 = vmor %vm1382_vm8, %vm141_vm14  ;;  %vm91_vm8 = vcmp.eq.s32.totalorder %v1363_v61, %v1378_v63 }
  0x83   :  { %vm1434_vm10 = vmor %vm108_vm0, %vm145_vm6  ;;  %vm147_vm0 = vcmp.eq.s32.totalorder %v1356_v60, %v1346_v56 }
  0x84   :  { %vm110_vm5 = vmor %vm53_vm3, %vm90_vm4  ;;  %v1630_v48 = vpop.permute.xlu2 %195 }
  0x85   :  { %vm1444_vm14 = vmor %vm109_vm7, %vm146_vm12  ;;  %v1456_v12 = vpop.permute.xlu1 %189 }
  0x86   :  { %vm1452_vm2 = vmor %vm1402_vm15, %vm142_vm9  ;;  %v1458_v13 = vpop.permute.xlu0 %186  ;;  %vm202_vm6 = vcmp.eq.s32.totalorder %v1344_v55, %v1456_v12  ;;  %vm143_vm9 = vcmp.eq.s32.totalorder %v1363_v61, %v1330_v49 }
  0x87   :  { %vm1460_vm3 = vmor %vm110_vm5, %vm147_vm0  ;;  %vm197_vm4 = vcmp.eq.s32.totalorder %v1344_v55, %v1458_v13  ;;  %vm198_vm7 = vcmp.eq.s32.totalorder %v1353_v59, %v1458_v13 }
  0x88   :  { %vm1468_vm15 = vmor %vm54_vm1, %vm91_vm8  ;;  %vm254_vm1 = vcmp.eq.s32.totalorder %v1344_v55, %v1390_v2 }
  0x89   :  { %vm217_vm5 = vmor %vm1396_vm13, %vm197_vm4  ;;  %vm203_vm13 = vcmp.eq.s32.totalorder %v1353_v59, %v1456_v12  ;;  %vm148_vm4 = vcmp.eq.s32.totalorder %v1363_v61, %v1346_v56 }
  0x8a   :  { %vm1485_vm12 = vmor %vm1434_vm10, %vm202_vm6  ;;  %vm199_vm10 = vcmp.eq.s32.totalorder %v1356_v60, %v1458_v13  ;;  %vm1892_vm6 = vnez %v1875_v6 }
  0x8b   :  { %v1889_v18 = vsel %vm1485_vm12, 4294967295, %v1888_v18  ;;  %vm1493_vm8 = vmor %vm217_vm5, %vm254_vm1 }
  0x8c   :  { %vm218_vm0 = vmor %vm1428_vm11, %vm198_vm7  ;;  %vm255_vm11 = vcmp.eq.s32.totalorder %v1353_v59, %v1390_v2  ;;  %vm204_vm7 = vcmp.eq.s32.totalorder %v1356_v60, %v1456_v12  ;;  %v882_v29 = vsel %vm1493_vm8, 1.0, %v1149_v28 }
  0x8d   :  { %vm1505_vm12 = vmor %vm1892_vm6, %vm143_vm9  ;;  %v1529_v24 = vpop.permute.xlu1 %41 }
  0x8e   :  { %vm1511_vm5 = vmor %vm1444_vm14, %vm203_vm13  ;;  %v1531_v25 = vpop.permute.xlu0 %246 }
  0x8f   :  { %vm1521_vm1 = vmor %vm1468_vm15, %vm148_vm4  ;;  %vm259_vm15 = vcmp.eq.s32.totalorder %v1344_v55, %v1531_v25  ;;  %vm260_vm13 = vcmp.eq.s32.totalorder %v1353_v59, %v1531_v25  ;;  %vm1905_vm4 = vnez %v1889_v18 }
  0x90   :  { %vm1525_vm9 = vmor %vm218_vm0, %vm255_vm11  ;;  %vm200_vm11 = vcmp.eq.s32.totalorder %v1363_v61, %v1458_v13 }
  0x91   :  { %vm1535_vm14 = vmor %vm1452_vm2, %vm199_vm10  ;;  %vm261_vm2 = vcmp.eq.s32.totalorder %v1356_v60, %v1531_v25  ;;  %v883_v32 = vsel %vm1525_vm9, 1.0, %v1149_v28 }
  0x92   :  { %vm1545_vm0 = vmor %vm1460_vm3, %vm204_vm7  ;;  %vm256_vm3 = vcmp.eq.s32.totalorder %v1356_v60, %v1390_v2  ;;  %vm205_vm7 = vcmp.eq.s32.totalorder %v1363_v61, %v1456_v12 }
  0x93   :  { %vm279_vm6 = vmor %vm1905_vm4, %vm259_vm15 }
  0x94   :  { %v887_v30 = vsel %vm279_vm6, 1.0, %v1149_v28  ;;  %vm280_vm10 = vmor %vm1511_vm5, %vm260_vm13  ;;  %vm257_vm13 = vcmp.eq.s32.totalorder %v1363_v61, %v1390_v2  ;;  %vm61_vm6 = vcmp.eq.s32.totalorder %v1344_v55, %v1481_v17 }
  0x95   :  { %v334_v31 = vpack.c.bf16 %v887_v30, %v882_v29  ;;  %v888_v33 = vsel %vm280_vm10, 1.0, %v1149_v28  ;;  %vm276_vm8 = vmor %vm1535_vm14, %vm256_vm3  ;;  %vm262_vm14 = vcmp.eq.s32.totalorder %v1363_v61, %v1531_v25  ;;  %v1585_v39 = vpop.permute.xlu1 %81 }
  0x96   :  { %v335_v35 = vpack.c.bf16 %v888_v33, %v883_v32  ;;  %vm281_vm5 = vmor %vm1545_vm0, %vm261_vm2  ;;  %v884_v36 = vsel %vm276_vm8, 1.0, %v1149_v28  ;;  %v1587_v40 = vpop.permute.xlu0 %78  ;;  %vm150_vm8 = vcmp.eq.s32.totalorder %v1344_v55, %v1571_v34 }
  0x97   :  { %672 = vmatmul.bf16.vlgmr.msra.gmra.mxu0 %v334_v31  ;;  %v889_v37 = vsel %vm281_vm5, 1.0, %v1149_v28  ;;  %vm220_vm9 = vmor %vm1505_vm12, %vm200_vm11  ;;  %vm56_vm12 = vcmp.eq.s32.totalorder %v1344_v55, %v1529_v24  ;;  %vm93_vm2 = vcmp.eq.s32.totalorder %v1344_v55, %v1587_v40  ;;  %vm94_vm3 = vcmp.eq.s32.totalorder %v1353_v59, %v1587_v40  ;;  %v803_v31 = vld [vmem:[%s1865_s4 + $0x60] sm:$0xff] }
  0x98   :  { %691 = vmatmul.bf16.vlgmr.msra.gmra.mxu1 %v335_v35  ;;  %v336_v38 = vpack.c.bf16 %v889_v37, %v884_v36  ;;  %vm225_vm15 = vmor %vm1521_vm1, %vm205_vm7  ;;  %vm98_vm1 = vcmp.eq.s32.totalorder %v1344_v55, %v1585_v39  ;;  %vm99_vm7 = vcmp.eq.s32.totalorder %v1353_v59, %v1585_v39 }
  0x99   :  { %vm277_vm0 = vmor %vm220_vm9, %vm257_vm13  ;;  %vm57_vm9 = vcmp.eq.s32.totalorder %v1353_v59, %v1529_v24  ;;  %vm95_vm13 = vcmp.eq.s32.totalorder %v1356_v60, %v1587_v40 }
  0x9a   :  { %710 = vmatmul.bf16.vlgmr.msra.gmra.mxu2 %v336_v38  ;;  %vm282_vm4 = vmor %vm225_vm15, %vm262_vm14  ;;  %v885_v41 = vsel %vm277_vm0, 1.0, %v1149_v28  ;;  %vm62_vm14 = vcmp.eq.s32.totalorder %v1353_v59, %v1481_v17 }
  0x9b   :  { %v890_v42 = vsel %vm282_vm4, 1.0, %v1149_v28  ;;  %vm113_vm10 = vmor %vm56_vm12, %vm93_vm2  ;;  %vm151_vm4 = vcmp.eq.s32.totalorder %v1353_v59, %v1571_v34  ;;  %vm100_vm12 = vcmp.eq.s32.totalorder %v1356_v60, %v1585_v39  ;;  %vm58_vm2 = vcmp.eq.s32.totalorder %v1356_v60, %v1529_v24 }
  0x9c   :  { %v337_v43 = vpack.c.bf16 %v890_v42, %v885_v41  ;;  %vm1601_vm11 = vmor %vm61_vm6, %vm98_vm1  ;;  %vm63_vm1 = vcmp.eq.s32.totalorder %v1356_v60, %v1481_v17  ;;  %v802_v42 = vld [vmem:[%s1865_s4 + $0x58] sm:$0xff] }
  0x9d   :  { %vm1609_vm5 = vmor %vm113_vm10, %vm150_vm8  ;;  %v1641_v52 = vpop.permute.xlu1 %192 }
  0x9e   :  { %729 = vmatmul.bf16.vlgmr.msra.gmra.mxu3 %v337_v43  ;;  %vm114_vm15 = vmor %vm57_vm9, %vm94_vm3  ;;  %v1643_v53 = vpop.permute.xlu0 %138  ;;  %vm207_vm8 = vcmp.eq.s32.totalorder %v1344_v55, %v1641_v52  ;;  %v801_v43 = vld [vmem:[%s1865_s4 + $0x50] sm:$0xff] }
  0x9f   :  { %vm1622_vm0 = vmor %vm62_vm14, %vm99_vm7  ;;  %vm155_vm3 = vcmp.eq.s32.totalorder %v1344_v55, %v1643_v53  ;;  %vm156_vm14 = vcmp.eq.s32.totalorder %v1353_v59, %v1643_v53 }
  0xa0   :  { %vm1632_vm6 = vmor %vm114_vm15, %vm151_vm4  ;;  %vm212_vm15 = vcmp.eq.s32.totalorder %v1344_v55, %v1630_v48  ;;  %vm208_vm4 = vcmp.eq.s32.totalorder %v1353_v59, %v1641_v52 }
  0xa1   :  { %vm1647_vm10 = vmor %vm58_vm2, %vm95_vm13 }
  0xa2   :  { %vm1655_vm7 = vmor %vm63_vm1, %vm100_vm12  ;;  %vm157_vm1 = vcmp.eq.s32.totalorder %v1356_v60, %v1643_v53 }
  0xa3   :  { %vm175_vm9 = vmor %vm1601_vm11, %vm155_vm3 }
  0xa4   :  { %vm1667_vm13 = vmor %vm1609_vm5, %vm207_vm8  ;;  %vm213_vm5 = vcmp.eq.s32.totalorder %v1353_v59, %v1630_v48  ;;  %vm152_vm8 = vcmp.eq.s32.totalorder %v1356_v60, %v1571_v34 }
  0xa5   :  { %vm1676_vm11 = vmor %vm175_vm9, %vm212_vm15  ;;  %v1701_v8 = vpop.permute.xlu1 %252 }
  0xa6   :  { %vm176_vm12 = vmor %vm1622_vm0, %vm156_vm14  ;;  %v1703_v9 = vpop.permute.xlu0 %249  ;;  %vm269_vm9 = vcmp.eq.s32.totalorder %v1344_v55, %v1701_v8 }
  0xa7   :  { %vm1686_vm2 = vmor %vm1632_vm6, %vm208_vm4  ;;  %vm264_vm6 = vcmp.eq.s32.totalorder %v1344_v55, %v1703_v9  ;;  %vm265_vm14 = vcmp.eq.s32.totalorder %v1353_v59, %v1703_v9  ;;  %vm270_vm4 = vcmp.eq.s32.totalorder %v1353_v59, %v1701_v8 }
  0xa8   :  { %vm1692_vm3 = vmor %vm176_vm12, %vm213_vm5  ;;  %vm209_vm5 = vcmp.eq.s32.totalorder %v1356_v60, %v1641_v52 }
  0xa9   :  { %vm1707_vm0 = vmor %vm1647_vm10, %vm152_vm8 }
  0xaa   :  { %vm1719_vm15 = vmor %vm1655_vm7, %vm157_vm1  ;;  %vm214_vm1 = vcmp.eq.s32.totalorder %v1356_v60, %v1630_v48 }
  0xab   :  { %vm284_vm10 = vmor %vm1667_vm13, %vm264_vm6  ;;  %vm96_vm6 = vcmp.eq.s32.totalorder %v1363_v61, %v1587_v40 }
  0xac   :  { %vm289_vm12 = vmor %vm1676_vm11, %vm269_vm9  ;;  %v892_v14 = vsel %vm284_vm10, 1.0, %v1149_v28  ;;  %vm266_vm11 = vcmp.eq.s32.totalorder %v1356_v60, %v1703_v9 }
  0xad   :  { %v897_v15 = vsel %vm289_vm12, 1.0, %v1149_v28  ;;  %vm285_vm7 = vmor %vm1686_vm2, %vm265_vm14  ;;  %vm271_vm2 = vcmp.eq.s32.totalorder %v1356_v60, %v1701_v8  ;;  %vm101_vm14 = vcmp.eq.s32.totalorder %v1363_v61, %v1585_v39  ;;  %vm158_vm12 = vcmp.eq.s32.totalorder %v1363_v61, %v1643_v53 }
  0xae   :  { %v339_v16 = vpack.c.bf16 %v897_v15, %v892_v14  ;;  %vm290_vm13 = vmor %vm1692_vm3, %vm270_vm4  ;;  %v893_v59 = vsel %vm285_vm7, 1.0, %v1149_v28  ;;  %vm64_vm4 = vcmp.eq.s32.totalorder %v1363_v61, %v1481_v17  ;;  %vm153_vm7 = vcmp.eq.s32.totalorder %v1363_v61, %v1571_v34 }
  0xaf   :  { %v898_v18 = vsel %vm290_vm13, 1.0, %v1149_v28  ;;  %vm229_vm8 = vmor %vm1707_vm0, %vm209_vm5  ;;  %vm59_vm0 = vcmp.eq.s32.totalorder %v1363_v61, %v1529_v24  ;;  %vm210_vm13 = vcmp.eq.s32.totalorder %v1363_v61, %v1641_v52 }
  0xb0   :  { %677 = vmatmul.bf16.gmra.mxu0 %v339_v16  ;;  %v340_v19 = vpack.c.bf16 %v898_v18, %v893_v59  ;;  %vm234_vm3 = vmor %vm1719_vm15, %vm214_vm1  ;;  %v795_v18 = vld [vmem:[%s1865_s4 + $0x20] sm:$0xff] }
  0xb1   :  { %vm286_vm9 = vmor %vm229_vm8, %vm266_vm11  ;;  %vm267_vm8 = vcmp.eq.s32.totalorder %v1363_v61, %v1703_v9 }
  0xb2   :  { %696 = vmatmul.bf16.gmra.mxu1 %v340_v19  ;;  %vm291_vm10 = vmor %vm234_vm3, %vm271_vm2  ;;  %v894_v20 = vsel %vm286_vm9, 1.0, %v1149_v28  ;;  %vm215_vm2 = vcmp.eq.s32.totalorder %v1363_v61, %v1630_v48  ;;  %vm87_vm9 = vcmp.eq.s32.totalorder %v29_v21, %v1348_v57 }
  0xb3   :  { %v899_v60 = vsel %vm291_vm10, 1.0, %v1149_v28  ;;  %vm116_vm15 = vmor %vm59_vm0, %vm96_vm6  ;;  %vm272_vm6 = vcmp.eq.s32.totalorder %v1363_v61, %v1701_v8  ;;  %vm92_vm0 = vcmp.eq.s32.totalorder %v29_v21, %v1378_v63 }
  0xb4   :  { %v341_v22 = vpack.c.bf16 %v899_v60, %v894_v20  ;;  %vm121_vm5 = vmor %vm64_vm4, %vm101_vm14  ;;  %vm50_vm14 = vcmp.eq.s32.totalorder %v29_v21, %v1350_v58  ;;  %vm55_vm4 = vcmp.eq.s32.totalorder %v29_v21, %v1380_v0 }
  0xb5   :  { %vm173_vm11 = vmor %vm116_vm15, %vm153_vm7 }
  0xb6   :  { %715 = vmatmul.bf16.gmra.mxu2 %v341_v22  ;;  %vm178_vm1 = vmor %vm121_vm5, %vm158_vm12  ;;  %vm144_vm12 = vcmp.eq.s32.totalorder %v29_v21, %v1330_v49 }
  0xb7   :  { %vm230_vm3 = vmor %vm173_vm11, %vm210_vm13  ;;  %vm201_vm11 = vcmp.eq.s32.totalorder %v29_v21, %v1458_v13 }
  0xb8   :  { %vm235_vm10 = vmor %vm178_vm1, %vm215_vm2  ;;  %vm149_vm1 = vcmp.eq.s32.totalorder %v29_v21, %v1346_v56 }
  0xb9   :  { %vm287_vm15 = vmor %vm230_vm3, %vm267_vm8  ;;  %vm206_vm3 = vcmp.eq.s32.totalorder %v29_v21, %v1456_v12 }
  0xba   :  { %vm292_vm5 = vmor %vm235_vm10, %vm272_vm6  ;;  %v895_v55 = vsel %vm287_vm15, 1.0, %v1149_v28  ;;  %vm263_vm10 = vcmp.eq.s32.totalorder %v29_v21, %v1531_v25  ;;  %vm97_vm15 = vcmp.eq.s32.totalorder %v29_v21, %v1587_v40  ;;  %v806_v25 = vld [vmem:[%s1865_s4 + $0x78] sm:$0xff] }
  0xbb   :  { %v900_v23 = vsel %vm292_vm5, 1.0, %v1149_v28  ;;  %vm107_vm7 = vmor %vm50_vm14, %vm87_vm9  ;;  %vm258_vm9 = vcmp.eq.s32.totalorder %v29_v21, %v1390_v2  ;;  %vm102_vm14 = vcmp.eq.s32.totalorder %v29_v21, %v1585_v39  ;;  %816 = vmatpush.msrb.mxu1 %v806_v25 }
  0xbc   :  { %v342_v26 = vpack.c.bf16 %v900_v23, %v895_v55  ;;  %vm112_vm13 = vmor %vm55_vm4, %vm92_vm0  ;;  %vm60_vm4 = vcmp.eq.s32.totalorder %v29_v21, %v1529_v24  ;;  %v793_v55 = vld [vmem:[%s1865_s4 + $0x10] sm:$0xff] }
  0xbd   :  { %vm164_vm2 = vmor %vm107_vm7, %vm144_vm12  ;;  %vm65_vm12 = vcmp.eq.s32.totalorder %v29_v21, %v1481_v17  ;;  %817 = vmatpush.msrb.mxu1 %v805_v27 }
  0xbe   :  { %734 = vmatmul.bf16.gmra.mxu3 %v342_v26  ;;  %vm169_vm8 = vmor %vm112_vm13, %vm149_vm1  ;;  %vm159_vm1 = vcmp.eq.s32.totalorder %v29_v21, %v1643_v53 }
  0xbf   :  { %vm221_vm6 = vmor %vm164_vm2, %vm201_vm11  ;;  %vm154_vm11 = vcmp.eq.s32.totalorder %v29_v21, %v1571_v34 }
  0xc0   :  { %vm226_vm5 = vmor %vm169_vm8, %vm206_vm3  ;;  %vm211_vm3 = vcmp.eq.s32.totalorder %v29_v21, %v1641_v52 }
  0xc1   :  { %vm278_vm0 = vmor %vm221_vm6, %vm258_vm9  ;;  %vm216_vm9 = vcmp.eq.s32.totalorder %v29_v21, %v1630_v48 }
  0xc2   :  { %vm283_vm7 = vmor %vm226_vm5, %vm263_vm10  ;;  %v886_v49 = vsel %vm278_vm0, 1.0, %v1149_v28  ;;  %vm268_vm10 = vcmp.eq.s32.totalorder %v29_v21, %v1703_v9  ;;  %vm273_vm5 = vcmp.eq.s32.totalorder %v29_v21, %v1701_v8  ;;  %v794_v21 = vld [vmem:[%s1865_s4 + $0x18] sm:$0xff] }
  0xc3   :  { %v891_v56 = vsel %vm283_vm7, 1.0, %v1149_v28  ;;  %vm117_vm13 = vmor %vm60_vm4, %vm97_vm15 }
  0xc4   :  { %v338_v57 = vpack.c.bf16 %v891_v56, %v886_v49  ;;  %vm122_vm2 = vmor %vm65_vm12, %vm102_vm14  ;;  %v792_v56 = vld [vmem:[%s1865_s4 + $0x8] sm:$0xff]  ;;  %vm813_vm14 = vcmask 1041409   ;;  %vm836_vm12 = vcmask 1041408  }
  0xc5   :  { %vm174_vm8 = vmor %vm117_vm13, %vm154_vm11 }
  0xc6   :  { %748 = vmatmul.bf16.vlgmr.msrb.gmra.mxu0 %v338_v57  ;;  %vm179_vm6 = vmor %vm122_vm2, %vm159_vm1 }
  0xc7   :  { %vm231_vm0 = vmor %vm174_vm8, %vm211_vm3 }
  0xc8   :  { %vm236_vm7 = vmor %vm179_vm6, %vm216_vm9 }
  0xc9   :  { %vm288_vm4 = vmor %vm231_vm0, %vm268_vm10 }
  0xca   :  { %vm293_vm15 = vmor %vm236_vm7, %vm273_vm5  ;;  %v896_v58 = vsel %vm288_vm4, 1.0, %v1149_v28 }
  0xcb   :  { %v901_v61 = vsel %vm293_vm15, 1.0, %v1149_v28  ;;  %v804_v28 = vld [vmem:[%s1865_s4 + $0x68] sm:$0xff] }
  0xcc   :  { %v343_v63 = vpack.c.bf16 %v901_v61, %v896_v58  ;;  %818 = vmatpush.msrb.mxu1 %v804_v28 }
  0xce   :  { %753 = vmatmul.bf16.vlgmr.msrb.gmra.mxu2 %v343_v63  ;;  %819 = vmatpush.msrb.mxu1 %v803_v31  ;;  %v791_v63 = vld [vmem:[%s1865_s4] sm:$0xff] }
  0xd0   :  { %820 = vmatpush.msrb.mxu1 %v802_v42 }
  0xd2   :  { %821 = vmatpush.msrb.mxu1 %v801_v43 }
  0xd4   :  { %822 = vmatpush.msrb.mxu1 %v800_v47 }
  0xd6   :  { %823 = vmatpush.msrb.mxu1 %v799_v50 }
  0xd8   :  { %824 = vmatpush.msrb.mxu1 %v798_v62 }
  0xda   :  { %825 = vmatpush.msrb.mxu1 %v797_v5 }
  0xdc   :  { %826 = vmatpush.msrb.mxu1 %v796_v10 }
  0xde   :  { %827 = vmatpush.msrb.mxu1 %v795_v18 }
  0xe0   :  { %828 = vmatpush.msrb.mxu1 %v794_v21 }
  0xe2   :  { %829 = vmatpush.msrb.mxu1 %v793_v55 }
  0xe4   :  { %830 = vmatpush.msrb.mxu1 %v792_v56 }
  0xe6   :  { %831 = vmatpush.msrb.mxu1 %v791_v63 }
 0x114   :  { %v673_v0 = vpop.f32.mrf.mxu0 }
 0x115   :  { %v692_v17 = vpop.f32.mrf.mxu1 }
 0x116   :  { %v693_v34 = vadd.f32 %v692_v17, %v673_v0 }
 0x11c   :  { %v675_v2 = vpop.f32.mrf.mxu0 }
 0x11d   :  { %v711_v12 = vpop.f32.mrf.mxu2  ;;  %v694_v32 = vpop.f32.mrf.mxu1 }
 0x11e   :  { %v712_v35 = vadd.f32 %v711_v12, %v693_v34  ;;  %v695_v37 = vadd.f32 %v694_v32, %v675_v2 }
 0x121   :  { %v730_v30 = vpop.f32.mrf.mxu3 }
 0x122   :  { %v731_v40 = vadd.f32 %v730_v30, %v712_v35 }
 0x125   :  { %v713_v24 = vpop.f32.mrf.mxu2 }
 0x126   :  { %v714_v41 = vadd.f32 %v713_v24, %v695_v37 }
 0x129   :  { %v732_v38 = vpop.f32.mrf.mxu3 }
 0x12a   :  { %v733_v48 = vadd.f32 %v732_v38, %v714_v41  ;;  %v1117_v38 = vld [vmem:[%s1866_s5] ss:$0 sm:$0xff]  ;;  %s857_s5 = sshll.u32 %s1867_s6, 4  ;;  %s858_s5 = int_to_ptr.hbm [resolvable:$true] %s857_s5 }
 0x12d   :  { %v678_v13 = vpop.f32.mrf.mxu0 }
 0x12f   :  { %v697_v39 = vpop.f32.mrf.mxu1 }
 0x130   :  { %v698_v52 = vadd.f32 %v697_v39, %v678_v13 }
 0x135   :  { %v680_v29 = vpop.f32.mrf.mxu0 }
 0x137   :  { %v699_v6 = vpop.f32.mrf.mxu1 }
 0x138   :  { %v700_v16 = vadd.f32 %v699_v6, %v680_v29 }
 0x139   :  { %v716_v33 = vpop.f32.mrf.mxu2 }
 0x13a   :  { %v717_v3 = vadd.f32 %v716_v33, %v698_v52 }
 0x141   :  { %v718_v44 = vpop.f32.mrf.mxu2  ;;  %v735_v1 = vpop.f32.mrf.mxu3 }
 0x142   :  { %v736_v15 = vadd.f32 %v735_v1, %v717_v3  ;;  %v719_v19 = vadd.f32 %v718_v44, %v700_v16 }
 0x143   :  { %v749_v36 = vpop.f32.mrf.mxu0 }
 0x144   :  { %v750_v45 = vadd.f32 %v749_v36, %v731_v40 }
 0x146   :  { %v763_v53 = vadd.f32 %v1116_v46, %v750_v45 }
 0x148   :  { %v767_v8 = vmax.f32 %v763_v53, 0.0 }
 0x149   :  { %v737_v23 = vpop.f32.mrf.mxu3 }
 0x14a   :  { %v773_v20 = vmul.f32 %v771_v11, %v767_v8  ;;  %v738_v26 = vadd.f32 %v737_v23, %v719_v19 }
 0x14b   :  { %v751_v51 = vpop.f32.mrf.mxu0 }
 0x14c   :  { %v752_v54 = vadd.f32 %v751_v51, %v733_v48 }
 0x14e   :  { %v764_v4 = vadd.f32 %v1116_v46, %v752_v54 }
 0x150   :  { %v768_v9 = vmax.f32 %v764_v4, 0.0 }
 0x151   :  { %v754_v14 = vpop.f32.mrf.mxu2 }
 0x152   :  { %v774_v59 = vmul.f32 %v772_v7, %v768_v9  ;;  %v755_v60 = vadd.f32 %v754_v14, %v736_v15 }
 0x154   :  { %v777_v22 = vmax.f32 %v773_v20, %v774_v59  ;;  %v765_v49 = vadd.f32 %v1116_v46, %v755_v60 }
 0x156   :  { %v778_v58 = vrot.slane %v777_v22, 4  ;;  %v769_v0 = vmax.f32 %v765_v49, 0.0 }
 0x158   :  { %v779_v12 = vmax.f32 %v777_v22, %v778_v58  ;;  %v775_v17 = vmul.f32 %v771_v11, %v769_v0 }
 0x159   :  { %v756_v57 = vpop.f32.mrf.mxu2 }
 0x15a   :  { %v757_v61 = vadd.f32 %v756_v57, %v738_v26  ;;  %v780_v27 = vrot.slane %v779_v12, 2 }
 0x15c   :  { %v766_v2 = vadd.f32 %v1116_v46, %v757_v61  ;;  %v781_v30 = vmax.f32 %v779_v12, %v780_v27 }
 0x15e   :  { %v770_v13 = vmax.f32 %v766_v2, 0.0  ;;  %v782_v32 = vrot.slane %v781_v30, 1 }
 0x160   :  { %v776_v24 = vmul.f32 %v772_v7, %v770_v13  ;;  %v783_v35 = vmax.f32 %v781_v30, %v782_v32 }
 0x162   :  { %v784_v25 = vmax.f32 %v775_v17, %v776_v24 }
 0x164   :  { %v785_v29 = vrot.slane %v784_v25, 4 }
 0x166   :  { %v786_v28 = vmax.f32 %v784_v25, %v785_v29 }
 0x168   :  { %v787_v31 = vrot.slane %v786_v28, 2 }
 0x16a   :  { %v788_v33 = vmax.f32 %v786_v28, %v787_v31 }
 0x16c   :  { %v789_v34 = vrot.slane %v788_v33, 1 }
 0x16e   :  { %v790_v36 = vmax.f32 %v788_v33, %v789_v34 }
 0x170   :  { %v814_v37 = vsel %vm813_vm14, %v790_v36, %v783_v35 }
 0x171   :  { %832 = vmatmul.f32.vlgmr.msrb.gmra.mxu1 %v814_v37 }
 0x1ee   :  { %v833_v39 = vpop.f32.mrf.mxu1 }
 0x1ef   :  { %v834_v40 = vadd.f32 %v1117_v38, %v833_v39 }
 0x1f1   :  { %v837_v41 = vsel %vm836_vm12, %v834_v40, -inf }
 0x1f2   :  { %838 = vmax.xlane.f32.xlu2 %v837_v41 }
 0x265   :  { %v839_v42 = vpop.xlane.xlu2 %838 }
 0x266   :  { %v840_v43 = vsub.f32 %v834_v40, %v839_v42 }
 0x268   :  { %v841_v44 = vmul.f32 1.442695, %v840_v43 }
 0x26a   :  { %1118 = vpow2.f32 %v841_v44 }
 0x270   :  { %v1119_v45 = vpop.eup %1118 }
 0x271   :  { %v843_v46 = vsel %vm836_vm12, %v1119_v45, 0.0 }
 0x272   :  { %844 = vadd.xlane.f32.xlu0 %v843_v46 }
 0x2e5   :  { %v845_v47 = vpop.xlane.xlu0 %844 }
 0x2e6   :  { %1120 = vlog2.f32 %v845_v47 }
 0x2ec   :  { %v1121_v48 = vpop.eup %1120 }
 0x2ed   :  { %v847_v50 = vmul.f32 0.6931472, %v1121_v48 }
 0x2ef   :  { %v848_v51 = vsub.f32 %v840_v43, %v847_v50 }
 0x2f1   :  { %849 = vst [vmem:[#allocation2] sm:$0x3] %v848_v51 }
 0x2f2   :  { %860 = dma.vmem_to_hbm [thread:$0]  %s856_s28, 32, %s858_s5, [#allocation3]  }
 0x2f3   :  { %1146 = dma.done.wait [#allocation3], 32  }
 0x2f4   :  { %1147 = vsyncadd [#allocation3], 4294967264 }
 0x2f5   :  { %865 = vsyncpa [#allocation3], 1 }

</bundles_post_ra>
